<compile_context>
chip_gen: v7x
topology: tpu7x:2x2x1
jax: 0.10.0
libtpu: 0.0.40
codegen_flags: <defaults>
</compile_context>

<pallas_src>
import functools

import numpy as np
import jax
import jax.numpy as jnp
from jax.experimental import pallas as pl
from jax.experimental.pallas import tpu as pltpu

# ----------------------------------------------------------------------------
# Module structure constants (from CRNN.__init__)
# ----------------------------------------------------------------------------
CNN_STRUCT = ((64,), (128,), (256, 256), (512, 512), (512,))
CNN_PARAS = ((3, 1, 1), (3, 1, 1), (3, 1, 1), (3, 1, 1), (2, 1, 0))
POOL_STRUCT = ((2, 2), (2, 2), (2, 1), (2, 1), None)
BATCHNORM = (False, False, False, True, False)
HIDDEN = 256

# Max kernel working set here is well under 16 MiB, so 32 MiB scoped VMEM is
# safe on v5e/v6e (128 MiB physical) and v7x (64 MiB physical).
VMEM_LIMIT = 32 * 1024 * 1024


def _round_up(v, m):
    return ((v + m - 1) // m) * m


# ----------------------------------------------------------------------------
# Pallas kernel 1: single-K-tile matmul + bias (+ optional ReLU)
#   bf16 operands, f32 accumulation on the MXU.  Used for the first conv
#   (tiny im2col, K=9->16), LSTM input projections (K=512) and the FC layer.
# ----------------------------------------------------------------------------
def _matmul_bias_kernel(a_ref, b_ref, bias_ref, o_ref, *, apply_relu):
    out = jnp.dot(a_ref[...], b_ref[...], preferred_element_type=jnp.float32)
    out = out + bias_ref[...]
    if apply_relu:
        out = jnp.maximum(out, 0.0)
    o_ref[...] = out.astype(o_ref.dtype)


def matmul_bias(a, b, bias, *, apply_relu=False, out_dtype=jnp.float32):
    """C = a @ b + bias.  b/bias are pre-padded & pre-cast in pack_params()."""
    M, K = a.shape
    Kb, N = b.shape
    a = a.astype(jnp.bfloat16)
    if K < Kb:                                   # first conv: K=9 -> 16
        a = jnp.pad(a, ((0, 0), (0, Kb - K)))

    tm = min(256, _round_up(M, 8))
    nmt = (M + tm - 1) // tm
    Mp = nmt * tm
    if Mp != M:
        a = jnp.pad(a, ((0, Mp - M), (0, 0)))
    tn = 512 if (N % 512 == 0) else N            # single N tile when N < 512

    out = pl.pallas_call(
        functools.partial(_matmul_bias_kernel, apply_relu=apply_relu),
        out_shape=jax.ShapeDtypeStruct((Mp, N), out_dtype),
        grid_spec=pltpu.PrefetchScalarGridSpec(
            num_scalar_prefetch=0,
            grid=(Mp // tm, N // tn),
            in_specs=[
                pl.BlockSpec((tm, Kb), lambda i, j: (i, 0)),
                pl.BlockSpec((Kb, tn), lambda i, j: (0, j)),
                pl.BlockSpec((1, tn), lambda i, j: (0, j)),
            ],
            out_specs=pl.BlockSpec((tm, tn), lambda i, j: (i, j)),
        ),
        compiler_params=pltpu.CompilerParams(
            dimension_semantics=("parallel", "parallel"),
            vmem_limit_bytes=VMEM_LIMIT),
    )(a, b, bias)
    return out[:M]


# ----------------------------------------------------------------------------
# Pallas kernel 2: fused-im2col convolution (shift-and-matmul over taps)
#   x_hbm : (R, Cin)  flattened padded NHWC activation, left in HBM (pl.ANY)
#   w_ref : (T, Cin, Cout) bf16 per-tap weights, resident in VMEM
#   Output rows follow the *padded* spatial grid; invalid rows/cols are junk
#   and get sliced off in the wrapper.  Bias + ReLU fused in the epilogue.
# ----------------------------------------------------------------------------
def _conv_taps_kernel(x_hbm, w_ref, b_ref, o_ref, xbuf, sems, acc_ref, *,
                      taps, tm):
    m0 = pl.program_id(0) * tm
    # Issue all tap DMAs up front; each tap reads a contiguous row window of
    # the flattened activation shifted by delta = i*Wp + j.
    for t, delta in enumerate(taps):
        pltpu.make_async_copy(x_hbm.at[pl.ds(m0 + delta, tm)], xbuf.at[t],
                              sems.at[t]).start()
    acc_ref[...] = jnp.zeros_like(acc_ref)
    for t, delta in enumerate(taps):
        pltpu.make_async_copy(x_hbm.at[pl.ds(m0 + delta, tm)], xbuf.at[t],
                              sems.at[t]).wait()
        acc_ref[...] += jnp.dot(xbuf[t], w_ref[t],
                                preferred_element_type=jnp.float32)
    out = acc_ref[...] + b_ref[...]
    o_ref[...] = jnp.maximum(out, 0.0).astype(o_ref.dtype)


def conv_taps_relu(x, conv):
    """Conv2d(stride=1) + bias + ReLU, NHWC bf16 in/out, no im2col in HBM."""
    B, Hh, W, Cin = x.shape
    k, p, Cout = conv["k"], conv["pad"], conv["cout"]
    Hp, Wp = Hh + 2 * p, W + 2 * p
    Ho, Wo = Hp - k + 1, Wp - k + 1
    taps = tuple(i * Wp + j for i in range(k) for j in range(k))
    T = len(taps)
    M = B * Hp * Wp
    tm = min(256, _round_up(M, 8))
    nmt = (M + tm - 1) // tm
    rows = nmt * tm + taps[-1]                  # DMA over-read guard rows

    xpad = jnp.pad(x.astype(jnp.bfloat16), ((0, 0), (p, p), (p, p), (0, 0)))
    xflat = xpad.reshape(M, Cin)
    xflat = jnp.pad(xflat, ((0, rows - M), (0, 0)))

    out_full = pl.pallas_call(
        functools.partial(_conv_taps_kernel, taps=taps, tm=tm),
        out_shape=jax.ShapeDtypeStruct((nmt * tm, Cout), jnp.bfloat16),
        grid_spec=pltpu.PrefetchScalarGridSpec(
            num_scalar_prefetch=0,
            grid=(nmt,),
            in_specs=[
                pl.BlockSpec(memory_space=pl.ANY),
                pl.BlockSpec((T, Cin, Cout), lambda m: (0, 0, 0)),
                pl.BlockSpec((1, Cout), lambda m: (0, 0)),
            ],
            out_specs=pl.BlockSpec((tm, Cout), lambda m: (m, 0)),
            scratch_shapes=[
                pltpu.VMEM((T, tm, Cin), jnp.bfloat16),
                pltpu.SemaphoreType.DMA((T,)),
                pltpu.VMEM((tm, Cout), jnp.float32),
            ],
        ),
        compiler_params=pltpu.CompilerParams(
            dimension_semantics=("arbitrary",),
            vmem_limit_bytes=VMEM_LIMIT),
    )(xflat, conv["w_taps"], conv["b"])

    # Keep only the valid output positions of the padded spatial grid.
    y = out_full[:M].reshape(B, Hp, Wp, Cout)[:, :Ho, :Wo, :]
    return y


# ----------------------------------------------------------------------------
# Pallas kernel 3: bidirectional LSTM recurrence.
#   grid=(2,): one grid step per direction (parallel -> both v7x cores).
#   gx layout: columns [fwd i f g o | bwd i f g o]; the backward direction is
#   time-reversed *inside* the kernel (reads gx[L-1-s], writes ho[L-1-s]).
# ----------------------------------------------------------------------------
def _bilstm_kernel(gx_ref, whh_ref, ho_ref, h_sc, c_sc, *, hidden, length):
    H = hidden
    d = pl.program_id(0)                 # 0 = forward, 1 = backward in time
    h_sc[...] = jnp.zeros_like(h_sc)
    c_sc[...] = jnp.zeros_like(c_sc)

    def step(s):
        t = jnp.where(d == 1, length - 1 - s, s)
        g = gx_ref[t].astype(jnp.float32) + jnp.dot(
            h_sc[...], whh_ref[0], preferred_element_type=jnp.float32)
        i = jax.nn.sigmoid(g[:, 0 * H:1 * H])
        f = jax.nn.sigmoid(g[:, 1 * H:2 * H])
        gg = jnp.tanh(g[:, 2 * H:3 * H])
        o = jax.nn.sigmoid(g[:, 3 * H:4 * H])
        c = f * c_sc[...] + i * gg
        h = o * jnp.tanh(c)
        c_sc[...] = c
        hb = h.astype(jnp.bfloat16)
        h_sc[...] = hb
        ho_ref[t] = hb

    if length <= 16:
        for s in range(length):          # full unroll: LLO sees every step
            step(s)
    else:
        @pl.loop(0, length)
        def _(s):
            step(s)


def bilstm_scan(gx, w_hh, hidden):
    """gx: (L, Bp, 8H) bf16, w_hh: (2, H, 4H) bf16 -> (L, Bp, 2H) bf16."""
    L, Bp, _ = gx.shape
    H = hidden
    return pl.pallas_call(
        functools.partial(_bilstm_kernel, hidden=H, length=L),
        out_shape=jax.ShapeDtypeStruct((L, Bp, 2 * H), jnp.bfloat16),
        grid_spec=pltpu.PrefetchScalarGridSpec(
            num_scalar_prefetch=0,
            grid=(2,),
            in_specs=[
                pl.BlockSpec((L, Bp, 4 * H), lambda d: (0, 0, d)),
                pl.BlockSpec((1, H, 4 * H), lambda d: (d, 0, 0)),
            ],
            out_specs=pl.BlockSpec((L, Bp, H), lambda d: (0, 0, d)),
            scratch_shapes=[
                pltpu.VMEM((Bp, H), jnp.bfloat16),   # h state (per direction)
                pltpu.VMEM((Bp, H), jnp.float32),    # c state (per direction)
            ],
        ),
        compiler_params=pltpu.CompilerParams(
            dimension_semantics=("parallel",),
            vmem_limit_bytes=VMEM_LIMIT),
    )(gx, w_hh)


def bilstm(x, layer):
    """x: (L, Bp, D) bf16, batch pre-padded. Returns (L, Bp, 2H) bf16."""
    H = layer["hidden"]
    L, Bp, D = x.shape
    gx = matmul_bias(x.reshape(L * Bp, D), layer["w_ih_cat"], layer["b_cat"],
                     apply_relu=False, out_dtype=jnp.bfloat16)
    gx = gx.reshape(L, Bp, 8 * H)        # metadata-only reshape
    return bilstm_scan(gx, layer["w_hh"], H)


# ----------------------------------------------------------------------------
# First conv (Cin=1, K=9): tiny im2col + generic matmul (negligible cost).
# ----------------------------------------------------------------------------
def _im2col_nhwc(x, kh, kw, pad):
    B, H, W, C = x.shape
    if pad:
        x = jnp.pad(x, ((0, 0), (pad, pad), (pad, pad), (0, 0)))
    Ho = H + 2 * pad - kh + 1
    Wo = W + 2 * pad - kw + 1
    cols = []
    for i in range(kh):
        for j in range(kw):
            cols.append(x[:, i:i + Ho, j:j + Wo, :])
    patches = jnp.stack(cols, axis=3)            # (B, Ho, Wo, kh*kw, C)
    patches = patches.reshape(B * Ho * Wo, kh * kw * C)
    return patches, Ho, Wo


def conv1_im2col_relu(x, conv):
    B = x.shape[0]
    patches, Ho, Wo = _im2col_nhwc(x, conv["k"], conv["k"], conv["pad"])
    out = matmul_bias(patches, conv["w2"], conv["b"],
                      apply_relu=True, out_dtype=jnp.bfloat16)
    return out.reshape(B, Ho, Wo, conv["cout"])


def maxpool_nhwc(x, ph, pw):
    B, H, W, C = x.shape
    x = x.reshape(B, H // ph, ph, W // pw, pw, C)
    return x.max(axis=(2, 4))


# ----------------------------------------------------------------------------
# Parameter init (matches CRNN._initialize_weights + PyTorch defaults)
# ----------------------------------------------------------------------------
def init_crnn_params(key, in_channels, out_channels, hidden=HIDDEN):
    params = {"cnn": []}
    cin = in_channels
    for i, outs in enumerate(CNN_STRUCT):
        k_sz, _stride, pad = CNN_PARAS[i]
        block = {"convs": [], "pool": POOL_STRUCT[i]}
        for cout in outs:
            key, sub = jax.random.split(key)
            n = k_sz * k_sz * cout
            w = jax.random.normal(sub, (cout, cin, k_sz, k_sz),
                                  jnp.float32) * np.sqrt(2.0 / n)
            b = jnp.zeros((cout,), jnp.float32)
            if BATCHNORM[i]:
                # eval-mode BN with default running stats folded into the conv
                scale = np.float32(1.0 / np.sqrt(1.0 + 1e-5))
                w = w * scale
                b = b * scale
            block["convs"].append({"w": w, "b": b, "k": k_sz, "pad": pad})
            cin = cout
        params["cnn"].append(block)

    def lstm_init(key, input_size, hidden):
        bound = 1.0 / np.sqrt(hidden)
        p = {}
        for d in ("fwd", "bwd"):
            key, k1, k2, k3, k4 = jax.random.split(key, 5)
            p[d] = {
                "w_ih": jax.random.uniform(k1, (4 * hidden, input_size),
                                           jnp.float32, -bound, bound),
                "w_hh": jax.random.uniform(k2, (4 * hidden, hidden),
                                           jnp.float32, -bound, bound),
                "b_ih": jax.random.uniform(k3, (4 * hidden,),
                                           jnp.float32, -bound, bound),
                "b_hh": jax.random.uniform(k4, (4 * hidden,),
                                           jnp.float32, -bound, bound),
            }
        return key, p

    key, params["rnn1"] = lstm_init(key, CNN_STRUCT[-1][-1], hidden)
    key, params["rnn2"] = lstm_init(key, 2 * hidden, hidden)

    bound = 1.0 / np.sqrt(2 * hidden)
    key, k1, k2 = jax.random.split(key, 3)
    params["fc"] = {
        "w": jax.random.uniform(k1, (out_channels, 2 * hidden),
                                jnp.float32, -bound, bound),
        "b": jax.random.uniform(k2, (out_channels,),
                                jnp.float32, -bound, bound),
    }
    return params


def pack_params(raw, hidden=HIDDEN):
    """One-time repack: per-tap conv weights, fused LSTM weights, bf16, all
    padding done here so the forward pass never pads/casts weights."""
    packed = {"cnn": []}
    first_conv = True
    for block in raw["cnn"]:
        pblock = {"convs": [], "pool": block["pool"]}
        for conv in block["convs"]:
            w, b, k, p = conv["w"], conv["b"], conv["k"], conv["pad"]
            cout, cin = int(w.shape[0]), int(w.shape[1])
            w_khwc = jnp.transpose(w, (2, 3, 1, 0))       # (kh, kw, Cin, Cout)
            if first_conv:
                w2 = w_khwc.reshape(k * k * cin, cout)
                kp = _round_up(k * k * cin, 16)
                w2 = jnp.pad(w2, ((0, kp - k * k * cin), (0, 0)))
                pblock["convs"].append({
                    "type": "im2col", "w2": w2.astype(jnp.bfloat16),
                    "b": b[None, :].astype(jnp.float32),
                    "k": k, "pad": p, "cout": cout})
                first_conv = False
            else:
                w_taps = w_khwc.reshape(k * k, cin, cout)
                pblock["convs"].append({
                    "type": "taps", "w_taps": w_taps.astype(jnp.bfloat16),
                    "b": b[None, :].astype(jnp.float32),
                    "k": k, "pad": p, "cout": cout})
        packed["cnn"].append(pblock)

    def pack_lstm(p):
        H = hidden
        # Input projection for both directions in one matmul:
        # columns [fwd i f g o | bwd i f g o]  (PyTorch gate order per dir).
        w_ih_cat = jnp.concatenate([p["fwd"]["w_ih"].T, p["bwd"]["w_ih"].T],
                                   axis=1)
        b_cat = jnp.concatenate([p["fwd"]["b_ih"] + p["fwd"]["b_hh"],
                                 p["bwd"]["b_ih"] + p["bwd"]["b_hh"]],
                                axis=0)[None, :]
        # Per-direction recurrent weights (H, 4H), stacked on a leading axis.
        w_hh = jnp.stack([p["fwd"]["w_hh"].T, p["bwd"]["w_hh"].T], axis=0)
        return {"w_ih_cat": w_ih_cat.astype(jnp.bfloat16),
                "b_cat": b_cat.astype(jnp.float32),
                "w_hh": w_hh.astype(jnp.bfloat16),
                "hidden": H}

    packed["rnn1"] = pack_lstm(raw["rnn1"])
    packed["rnn2"] = pack_lstm(raw["rnn2"])

    n_out = int(raw["fc"]["w"].shape[0])
    n_pad = _round_up(n_out, 128)
    w_t = jnp.pad(raw["fc"]["w"].T, ((0, 0), (0, n_pad - n_out)))
    b_fc = jnp.pad(raw["fc"]["b"], ((0, n_pad - n_out),))[None, :]
    packed["fc"] = {"w_t": w_t.astype(jnp.bfloat16),
                    "b": b_fc.astype(jnp.float32), "n": n_out}
    return packed


# ----------------------------------------------------------------------------
# Forward pass (mirrors CRNN.forward)
# ----------------------------------------------------------------------------
def crnn_forward(x, packed):
    # x: (B, C, H, W) NCHW like PyTorch; convert once to NHWC bf16, stay there.
    x = jnp.transpose(x, (0, 2, 3, 1)).astype(jnp.bfloat16)
    for block in packed["cnn"]:
        for conv in block["convs"]:
            if conv["type"] == "im2col":
                x = conv1_im2col_relu(x, conv)
            else:
                x = conv_taps_relu(x, conv)
        if block["pool"] is not None:
            x = maxpool_nhwc(x, *block["pool"])
    # x: (B, 1, W', 512) NHWC
    x = jnp.squeeze(x, axis=1)            # (B, W', C)
    x = jnp.transpose(x, (1, 0, 2))       # (L, B, C) time-major
    L, B, _ = x.shape
    Bp = max(8, _round_up(B, 8))
    if Bp != B:                           # pad batch once; keep Bp through RNNs
        x = jnp.pad(x, ((0, 0), (0, Bp - B), (0, 0)))
    x = bilstm(x, packed["rnn1"])         # (L, Bp, 2H) bf16
    x = bilstm(x, packed["rnn2"])
    y = matmul_bias(x.reshape(L * Bp, 2 * HIDDEN), packed["fc"]["w_t"],
                    packed["fc"]["b"], apply_relu=False,
                    out_dtype=jnp.float32)
    y = y.reshape(L, Bp, -1)[:, :B, :packed["fc"]["n"]]
    return y


# ----------------------------------------------------------------------------
if __name__ == "__main__":
    key = jax.random.PRNGKey(0)
    in_channels, out_channels = 1, 10
    batch, height, width = 2, 32, 16   # H=32 is required by the CNN stack

    key, kx, kp = jax.random.split(key, 3)
    x = jax.random.normal(kx, (batch, in_channels, height, width), jnp.float32)
    raw_params = init_crnn_params(kp, in_channels, out_channels)
    params = pack_params(raw_params)

    y = crnn_forward(x, params)
    y = jax.block_until_ready(y)

    # (W/4 - 1, batch, out_channels) = (3, 2, 10)
    assert y.shape == (width // 4 - 1, batch, out_channels), y.shape
    assert bool(jnp.all(jnp.isfinite(y)))
    print("KERNEL_OK")
</pallas_src>

<mosaic_0001>
module attributes {stable_mosaic.version = 11 : i64} {
  func.func @_matmul_bias_kernel(%arg0: i32, %arg1: i32, %arg2: memref<256x16xbf16, #tpu.memory_space<vmem>>, %arg3: memref<16x64xbf16, #tpu.memory_space<vmem>>, %arg4: memref<1x64xf32, #tpu.memory_space<vmem>>, %arg5: memref<256x64xbf16, #tpu.memory_space<vmem>>) attributes {dimension_semantics = [#tpu.dimension_semantics<parallel>, #tpu.dimension_semantics<parallel>], iteration_bounds = array<i64: 4, 1>, scalar_prefetch = 0 : i64, scratch_operands = 0 : i64, tpu.core_type = #tpu.core_type<tc>, window_params = [{transform_indices = @transform_0, window_bounds = array<i64: 256, 16>}, {transform_indices = @transform_1, window_bounds = array<i64: 16, 64>}, {transform_indices = @transform_2, window_bounds = array<i64: 1, 64>}, {transform_indices = @transform_3, window_bounds = array<i64: 256, 64>}]} {
    %c0 = arith.constant 0 : index
    %c0_0 = arith.constant 0 : index
    %0 = vector.load %arg2[%c0, %c0_0] : memref<256x16xbf16, #tpu.memory_space<vmem>>, vector<256x16xbf16>
    %c0_1 = arith.constant 0 : index
    %c0_2 = arith.constant 0 : index
    %1 = vector.load %arg3[%c0_1, %c0_2] : memref<16x64xbf16, #tpu.memory_space<vmem>>, vector<16x64xbf16>
    %cst = arith.constant dense<0.000000e+00> : vector<256x64xf32>
    %2 = tpu.matmul %0, %1, %cst {dimension_numbers = #tpu.dot_dimension_numbers<[1], [0], [0], [1], [0, 0, 1, 1], [], []>} : vector<256x16xbf16>, vector<16x64xbf16>, vector<256x64xf32> -> vector<256x64xf32>
    %c0_3 = arith.constant 0 : index
    %c0_4 = arith.constant 0 : index
    %3 = vector.load %arg4[%c0_3, %c0_4] : memref<1x64xf32, #tpu.memory_space<vmem>>, vector<1x64xf32>
    %4 = vector.broadcast %3 : vector<1x64xf32> to vector<256x64xf32>
    %5 = arith.addf %2, %4 : vector<256x64xf32>
    %cst_5 = arith.constant 0.000000e+00 : f32
    %6 = vector.broadcast %cst_5 : f32 to vector<256x64xf32>
    %7 = arith.maximumf %5, %6 : vector<256x64xf32>
    %8 = arith.truncf %7 : vector<256x64xf32> to vector<256x64xbf16>
    %c0_6 = arith.constant 0 : index
    %c0_7 = arith.constant 0 : index
    %9 = vector.load %arg5[%c0_6, %c0_7] : memref<256x64xbf16, #tpu.memory_space<vmem>>, vector<256x64xbf16>
    tpu.vector_store %arg5[%c0_6, %c0_7], %8 {strides = array<i32>} : memref<256x64xbf16, #tpu.memory_space<vmem>>, vector<256x64xbf16>,
    return
  }
  func.func @transform_0(%arg0: i32, %arg1: i32) -> (i32, i32) {
    %c0_i32 = arith.constant 0 : i32
    %c0_i32_0 = arith.constant 0 : i32
    return %arg0, %c0_i32 : i32, i32
  }
  func.func @transform_1(%arg0: i32, %arg1: i32) -> (i32, i32) {
    %c0_i32 = arith.constant 0 : i32
    %c0_i32_0 = arith.constant 0 : i32
    return %c0_i32, %arg1 : i32, i32
  }
  func.func @transform_2(%arg0: i32, %arg1: i32) -> (i32, i32) {
    %c0_i32 = arith.constant 0 : i32
    %c0_i32_0 = arith.constant 0 : i32
    return %c0_i32, %arg1 : i32, i32
  }
  func.func @transform_3(%arg0: i32, %arg1: i32) -> (i32, i32) {
    %c0_i32 = arith.constant 0 : i32
    return %arg0, %arg1 : i32, i32
  }
}

</mosaic_0001>

<bundles_post_ra>
// kernel: tpu_custom_call.1
= control target key start
LH: loop header
LB: loop body
LE: loop exit
PB: predicated region body
PF: predicated region fallthrough
CT: control target
= control target key end

     0   :  { %s1107_s12 = smov 0   ;;  %s1109_s13 = smov 0   ;;  %s1287_s0 = inlined_call_operand.vmem [shape: bf16[1024,16], index: 0, kind: input, shape index: {}]   ;;  %s1288_s1 = inlined_call_operand.vmem [shape: bf16[16,64], index: 1, kind: input, shape index: {}]   ;;  %s1289_s2 = inlined_call_operand.vmem [shape: f32[1,64], index: 2, kind: input, shape index: {}]   ;;  %s1290_s3 = inlined_call_operand.vmem [shape: bf16[1024,64], index: 3, kind: output, shape index: {}]  }
   0x1   :  { %s1111_s14 = smov 0  }
   0x2 LB: > { %s25_s15 = sadd.s32 1, %s1081_s13  ;;  %p864_p0 = scmp.ge.s32.totalorder %s1085_s14, 1  ;;  %s1085_s14 = sphi %s1111_s14, %s13_s14   ;;  %s1081_s13 = sphi %s1109_s13, %s1292_s13   ;;  %s1077_s12 = sphi %s1107_s12, %s1291_s12  }
   0x3   : > { %p27_p1 = scmp.ge.s32.totalorder %s25_s15, 4  ;;  %p169_p2 = scmp.lt.s32.totalorder %s1085_s14, 5 }
   0x5   : > { %s1294_s15 = smov (%p27_p1, %s25_s15), 0  ;;  %p170_p3 = pnand %p864_p0, %p169_p2 }
   0x6   : > { %v1046_v0 = vld [vmem:[%s1288_s1] sm:$0xff] (!%p170_p3)   ;;  %s865_s18 = sshll.u32 (!%p170_p3), %s1077_s12, 5  ;;  %vm353_vm0 = vcmask (!%p170_p3), 130048   ;;  %vm723_vm1 = vcmask (!%p170_p3), 519168  }
   0x7   : > { %173 = sbr.rel (%p170_p3) target bundleno = 266 (0x10a), region = 32  ;;  %p204_p4 = scmp.lt.s32.totalorder (!%p170_p3), %s865_s18, 127  ;;  %986 = vmatprep.subr.bf16.mxu0 (!%p170_p3), %v1046_v0  ;;  %1020 = vmatprep.subr.bf16.mxu1 (!%p170_p3), %v1046_v0  ;;  %v1173_v17 = vld [vmem:[%s1289_s2] ss:$0 sm:$0xff] (!%p170_p3) }
   0x8   : > { %987 = vmatpush3.bf16.msra.mxu0 (!%p170_p3), %v1046_v0  ;;  %1021 = vmatpush3.bf16.msra.mxu1 (!%p170_p3), %v1046_v0 }
   0xe   : > { %s1296_s18 = smov (!%p204_p4, %s865_s18), 127 }
   0xf   : > { %s866_s19 = sshll.u32 %s1296_s18, 2 }
  0x10   : > { %s1136_s22 = scalar_lea.vmem %s1287_s0, %s866_s19  ;;  %s1185_s27 = scalar_lea.vmem %s1290_s3, %s866_s19 }
  0x11   : > { %v1047_v1 = vld [vmem:[%s1136_s22] sm:$0xff]   ;;  %v1049_v3 = vld [vmem:[%s1136_s22 + $0x8] sm:$0xff]   ;;  %v1051_v5 = vld [vmem:[%s1136_s22 + $0x10] sm:$0xff]  }
  0x12   : > { %v1048_v2 = vld [vmem:[%s1136_s22 + $0x40] sm:$0xff]   ;;  %988 = vmatprep.mubr.msk.bf16.mxu0 %vm353_vm0, %v1047_v1  ;;  %v1050_v4 = vld [vmem:[%s1136_s22 + $0x48] sm:$0xff]   ;;  %v1052_v6 = vld [vmem:[%s1136_s22 + $0x50] sm:$0xff]  }
  0x13   : > { %1004 = vmatprep.mubr.msk.bf16.mxu1 %vm353_vm0, %v1048_v2  ;;  %989 = vmatmul.mubr.msk.bf16.vlgmr.msra.gmra.mrb[0].mxu0 %vm353_vm0, %v1049_v3  ;;  %v1053_v7 = vld [vmem:[%s1136_s22 + $0x18] sm:$0xff]   ;;  %v1055_v9 = vld [vmem:[%s1136_s22 + $0x20] sm:$0xff]   ;;  %v1057_v11 = vld [vmem:[%s1136_s22 + $0x28] sm:$0xff]  }
  0x14   : > { %1005 = vmatmul.mubr.msk.bf16.vlgmr.msra.gmra.mrb[0].mxu1 %vm353_vm0, %v1050_v4  ;;  %992 = vmatprep.mubr.msk.bf16.mxu0 %vm353_vm0, %v1051_v5  ;;  %v1054_v8 = vld [vmem:[%s1136_s22 + $0x58] sm:$0xff]   ;;  %v1056_v10 = vld [vmem:[%s1136_s22 + $0x60] sm:$0xff]   ;;  %v1058_v12 = vld [vmem:[%s1136_s22 + $0x68] sm:$0xff]  }
  0x15   : > { %1008 = vmatprep.mubr.msk.bf16.mxu1 %vm353_vm0, %v1052_v6  ;;  %v1059_v13 = vld [vmem:[%s1136_s22 + $0x30] sm:$0xff]   ;;  %v1061_v15 = vld [vmem:[%s1136_s22 + $0x38] sm:$0xff]  }
  0x16   : > { %v1060_v14 = vld [vmem:[%s1136_s22 + $0x70] sm:$0xff]   ;;  %v1062_v16 = vld [vmem:[%s1136_s22 + $0x78] sm:$0xff]  }
  0x1b   : > { %993 = vmatmul.mubr.msk.bf16.gmra.mrb[4].mxu0 %vm353_vm0, %v1053_v7 }
  0x1c   : > { %1009 = vmatmul.mubr.msk.bf16.gmra.mrb[4].mxu1 %vm353_vm0, %v1054_v8  ;;  %996 = vmatprep.mubr.msk.bf16.mxu0 %vm353_vm0, %v1055_v9 }
  0x1d   : > { %1012 = vmatprep.mubr.msk.bf16.mxu1 %vm353_vm0, %v1056_v10 }
  0x23   : > { %997 = vmatmul.mubr.msk.bf16.gmra.mrb[8].mxu0 %vm353_vm0, %v1057_v11 }
  0x24   : > { %1013 = vmatmul.mubr.msk.bf16.gmra.mrb[8].mxu1 %vm353_vm0, %v1058_v12  ;;  %1000 = vmatprep.mubr.msk.bf16.mxu0 %vm353_vm0, %v1059_v13 }
  0x25   : > { %1016 = vmatprep.mubr.msk.bf16.mxu1 %vm353_vm0, %v1060_v14 }
  0x2b   : > { %1001 = vmatmul.mubr.msk.bf16.gmra.mrb[12].mxu0 %vm353_vm0, %v1061_v15 }
  0x2c   : > { %1017 = vmatmul.mubr.msk.bf16.gmra.mrb[12].mxu1 %vm353_vm0, %v1062_v16 }
  0xe6   : > { %v990_v18 = vpop.f32.mrb[0].mxu0 }
  0xe7   : > { %v445_v19 = vadd.f32 %v990_v18, %v1173_v17  ;;  %v1006_v20 = vpop.f32.mrb[0].mxu1  ;;  %v436_v21 = vpop.f32.mrb[1].mxu0 }
  0xe8   : > { %v509_v22 = vadd.f32 %v1006_v20, %v1173_v17  ;;  %v437_v23 = vadd.f32 %v1173_v17, %v436_v21  ;;  %v500_v24 = vpop.f32.mrb[1].mxu1  ;;  %v991_v25 = vpop.f32.mrb[2].mxu0 }
  0xe9   : > { %v565_v26 = vmax.f32 %v445_v19, 0.0  ;;  %v501_v27 = vadd.f32 %v1173_v17, %v500_v24  ;;  %v448_v28 = vadd.f32 %v991_v25, %v1173_v17  ;;  %v1007_v29 = vpop.f32.mrb[2].mxu1  ;;  %v439_v30 = vpop.f32.mrb[3].mxu0 }
  0xea   : > { %v581_v31 = vmax.f32 %v509_v22, 0.0  ;;  %v563_v32 = vmax.f32 %v437_v23, 0.0  ;;  %v512_v33 = vadd.f32 %v1007_v29, %v1173_v17  ;;  %v440_v34 = vadd.f32 %v1173_v17, %v439_v30  ;;  %v503_v35 = vpop.f32.mrb[3].mxu1 }
  0xeb   : > { %v939_v36 = vpack.c.bf16 %v565_v26, %v565_v26  ;;  %v579_v37 = vmax.f32 %v501_v27, 0.0  ;;  %v566_v38 = vmax.f32 %v448_v28, 0.0  ;;  %v504_v39 = vadd.f32 %v1173_v17, %v503_v35 }
  0xec   : > { %v955_v40 = vpack.c.bf16 %v581_v31, %v581_v31  ;;  %v937_v41 = vpack.c.bf16 %v563_v32, %v563_v32  ;;  %v582_v42 = vmax.f32 %v512_v33, 0.0  ;;  %v564_v43 = vmax.f32 %v440_v34, 0.0 }
  0xed   : > { %726 = vst.msk [vmem:[%s1185_s27 + $0x8] sm:$0xf] %vm723_vm1, %v939_v36  ;;  %v953_v44 = vpack.c.bf16 %v579_v37, %v579_v37  ;;  %v940_v45 = vpack.c.bf16 %v566_v38, %v566_v38  ;;  %v580_v46 = vmax.f32 %v504_v39, 0.0 }
  0xee   : > { %742 = vst.msk [vmem:[%s1185_s27 + $0x48] sm:$0xf] %vm723_vm1, %v955_v40  ;;  %724 = vst.msk [vmem:[%s1185_s27] sm:$0xf] %vm723_vm1, %v937_v41  ;;  %v956_v47 = vpack.c.bf16 %v582_v42, %v582_v42  ;;  %v938_v48 = vpack.c.bf16 %v564_v43, %v564_v43  ;;  %v994_v49 = vpop.f32.mrb[4].mxu0 }
  0xef   : > { %740 = vst.msk [vmem:[%s1185_s27 + $0x40] sm:$0xf] %vm723_vm1, %v953_v44  ;;  %727 = vst.msk [vmem:[%s1185_s27 + $0xc] sm:$0xf] %vm723_vm1, %v940_v45  ;;  %v954_v50 = vpack.c.bf16 %v580_v46, %v580_v46  ;;  %v461_v51 = vadd.f32 %v994_v49, %v1173_v17  ;;  %v1010_v52 = vpop.f32.mrb[4].mxu1  ;;  %v452_v53 = vpop.f32.mrb[5].mxu0 }
  0xf0   : > { %743 = vst.msk [vmem:[%s1185_s27 + $0x4c] sm:$0xf] %vm723_vm1, %v956_v47  ;;  %725 = vst.msk [vmem:[%s1185_s27 + $0x4] sm:$0xf] %vm723_vm1, %v938_v48  ;;  %v525_v54 = vadd.f32 %v1010_v52, %v1173_v17  ;;  %v453_v55 = vadd.f32 %v1173_v17, %v452_v53  ;;  %v516_v56 = vpop.f32.mrb[5].mxu1  ;;  %v995_v57 = vpop.f32.mrb[6].mxu0 }
  0xf1   : > { %741 = vst.msk [vmem:[%s1185_s27 + $0x44] sm:$0xf] %vm723_vm1, %v954_v50  ;;  %v569_v58 = vmax.f32 %v461_v51, 0.0  ;;  %v517_v59 = vadd.f32 %v1173_v17, %v516_v56  ;;  %v464_v60 = vadd.f32 %v995_v57, %v1173_v17  ;;  %v1011_v61 = vpop.f32.mrb[6].mxu1  ;;  %v455_v62 = vpop.f32.mrb[7].mxu0 }
  0xf2   : > { %v585_v63 = vmax.f32 %v525_v54, 0.0  ;;  %v567_v0 = vmax.f32 %v453_v55, 0.0  ;;  %v528_v1 = vadd.f32 %v1011_v61, %v1173_v17  ;;  %v456_v2 = vadd.f32 %v1173_v17, %v455_v62  ;;  %v519_v3 = vpop.f32.mrb[7].mxu1 }
  0xf3   : > { %v943_v4 = vpack.c.bf16 %v569_v58, %v569_v58  ;;  %v583_v5 = vmax.f32 %v517_v59, 0.0  ;;  %v570_v6 = vmax.f32 %v464_v60, 0.0  ;;  %v520_v7 = vadd.f32 %v1173_v17, %v519_v3 }
  0xf4   : > { %v959_v8 = vpack.c.bf16 %v585_v63, %v585_v63  ;;  %v941_v9 = vpack.c.bf16 %v567_v0, %v567_v0  ;;  %v586_v10 = vmax.f32 %v528_v1, 0.0  ;;  %v568_v11 = vmax.f32 %v456_v2, 0.0 }
  0xf5   : > { %730 = vst.msk [vmem:[%s1185_s27 + $0x18] sm:$0xf] %vm723_vm1, %v943_v4  ;;  %v957_v12 = vpack.c.bf16 %v583_v5, %v583_v5  ;;  %v944_v13 = vpack.c.bf16 %v570_v6, %v570_v6  ;;  %v584_v14 = vmax.f32 %v520_v7, 0.0 }
  0xf6   : > { %746 = vst.msk [vmem:[%s1185_s27 + $0x58] sm:$0xf] %vm723_vm1, %v959_v8  ;;  %728 = vst.msk [vmem:[%s1185_s27 + $0x10] sm:$0xf] %vm723_vm1, %v941_v9  ;;  %v960_v15 = vpack.c.bf16 %v586_v10, %v586_v10  ;;  %v942_v16 = vpack.c.bf16 %v568_v11, %v568_v11  ;;  %v998_v18 = vpop.f32.mrb[8].mxu0 }
  0xf7   : > { %744 = vst.msk [vmem:[%s1185_s27 + $0x50] sm:$0xf] %vm723_vm1, %v957_v12  ;;  %731 = vst.msk [vmem:[%s1185_s27 + $0x1c] sm:$0xf] %vm723_vm1, %v944_v13  ;;  %v958_v19 = vpack.c.bf16 %v584_v14, %v584_v14  ;;  %v477_v20 = vadd.f32 %v998_v18, %v1173_v17  ;;  %v1014_v21 = vpop.f32.mrb[8].mxu1  ;;  %v468_v22 = vpop.f32.mrb[9].mxu0 }
  0xf8   : > { %747 = vst.msk [vmem:[%s1185_s27 + $0x5c] sm:$0xf] %vm723_vm1, %v960_v15  ;;  %729 = vst.msk [vmem:[%s1185_s27 + $0x14] sm:$0xf] %vm723_vm1, %v942_v16  ;;  %v541_v23 = vadd.f32 %v1014_v21, %v1173_v17  ;;  %v469_v24 = vadd.f32 %v1173_v17, %v468_v22  ;;  %v532_v25 = vpop.f32.mrb[9].mxu1  ;;  %v999_v26 = vpop.f32.mrb[10].mxu0 }
  0xf9   : > { %745 = vst.msk [vmem:[%s1185_s27 + $0x54] sm:$0xf] %vm723_vm1, %v958_v19  ;;  %v573_v27 = vmax.f32 %v477_v20, 0.0  ;;  %v533_v28 = vadd.f32 %v1173_v17, %v532_v25  ;;  %v480_v29 = vadd.f32 %v999_v26, %v1173_v17  ;;  %v1015_v30 = vpop.f32.mrb[10].mxu1  ;;  %v471_v31 = vpop.f32.mrb[11].mxu0 }
  0xfa   : > { %v589_v32 = vmax.f32 %v541_v23, 0.0  ;;  %v571_v33 = vmax.f32 %v469_v24, 0.0  ;;  %v544_v34 = vadd.f32 %v1015_v30, %v1173_v17  ;;  %v472_v35 = vadd.f32 %v1173_v17, %v471_v31  ;;  %v535_v36 = vpop.f32.mrb[11].mxu1 }
  0xfb   : > { %v947_v37 = vpack.c.bf16 %v573_v27, %v573_v27  ;;  %v587_v38 = vmax.f32 %v533_v28, 0.0  ;;  %v574_v39 = vmax.f32 %v480_v29, 0.0  ;;  %v536_v40 = vadd.f32 %v1173_v17, %v535_v36 }
  0xfc   : > { %v963_v41 = vpack.c.bf16 %v589_v32, %v589_v32  ;;  %v945_v42 = vpack.c.bf16 %v571_v33, %v571_v33  ;;  %v590_v43 = vmax.f32 %v544_v34, 0.0  ;;  %v572_v44 = vmax.f32 %v472_v35, 0.0 }
  0xfd   : > { %734 = vst.msk [vmem:[%s1185_s27 + $0x28] sm:$0xf] %vm723_vm1, %v947_v37  ;;  %v961_v45 = vpack.c.bf16 %v587_v38, %v587_v38  ;;  %v948_v46 = vpack.c.bf16 %v574_v39, %v574_v39  ;;  %v588_v47 = vmax.f32 %v536_v40, 0.0 }
  0xfe   : > { %750 = vst.msk [vmem:[%s1185_s27 + $0x68] sm:$0xf] %vm723_vm1, %v963_v41  ;;  %732 = vst.msk [vmem:[%s1185_s27 + $0x20] sm:$0xf] %vm723_vm1, %v945_v42  ;;  %v964_v48 = vpack.c.bf16 %v590_v43, %v590_v43  ;;  %v946_v49 = vpack.c.bf16 %v572_v44, %v572_v44  ;;  %v1002_v50 = vpop.f32.mrb[12].mxu0 }
  0xff   : > { %748 = vst.msk [vmem:[%s1185_s27 + $0x60] sm:$0xf] %vm723_vm1, %v961_v45  ;;  %735 = vst.msk [vmem:[%s1185_s27 + $0x2c] sm:$0xf] %vm723_vm1, %v948_v46  ;;  %v962_v51 = vpack.c.bf16 %v588_v47, %v588_v47  ;;  %v493_v52 = vadd.f32 %v1002_v50, %v1173_v17  ;;  %v1018_v53 = vpop.f32.mrb[12].mxu1  ;;  %v484_v54 = vpop.f32.mrb[13].mxu0 }
 0x100   : > { %751 = vst.msk [vmem:[%s1185_s27 + $0x6c] sm:$0xf] %vm723_vm1, %v964_v48  ;;  %733 = vst.msk [vmem:[%s1185_s27 + $0x24] sm:$0xf] %vm723_vm1, %v946_v49  ;;  %v557_v55 = vadd.f32 %v1018_v53, %v1173_v17  ;;  %v485_v56 = vadd.f32 %v1173_v17, %v484_v54  ;;  %v548_v57 = vpop.f32.mrb[13].mxu1  ;;  %v1003_v58 = vpop.f32.mrb[14].mxu0 }
 0x101   : > { %749 = vst.msk [vmem:[%s1185_s27 + $0x64] sm:$0xf] %vm723_vm1, %v962_v51  ;;  %v577_v59 = vmax.f32 %v493_v52, 0.0  ;;  %v549_v60 = vadd.f32 %v1173_v17, %v548_v57  ;;  %v496_v61 = vadd.f32 %v1003_v58, %v1173_v17  ;;  %v1019_v62 = vpop.f32.mrb[14].mxu1  ;;  %v487_v63 = vpop.f32.mrb[15].mxu0 }
 0x102   : > { %v593_v0 = vmax.f32 %v557_v55, 0.0  ;;  %v575_v1 = vmax.f32 %v485_v56, 0.0  ;;  %v560_v2 = vadd.f32 %v1019_v62, %v1173_v17  ;;  %v488_v3 = vadd.f32 %v1173_v17, %v487_v63  ;;  %v551_v4 = vpop.f32.mrb[15].mxu1 }
 0x103   : > { %v951_v5 = vpack.c.bf16 %v577_v59, %v577_v59  ;;  %v591_v6 = vmax.f32 %v549_v60, 0.0  ;;  %v578_v7 = vmax.f32 %v496_v61, 0.0  ;;  %v552_v8 = vadd.f32 %v1173_v17, %v551_v4 }
 0x104   : > { %v967_v9 = vpack.c.bf16 %v593_v0, %v593_v0  ;;  %v949_v10 = vpack.c.bf16 %v575_v1, %v575_v1  ;;  %v594_v11 = vmax.f32 %v560_v2, 0.0  ;;  %v576_v12 = vmax.f32 %v488_v3, 0.0 }
 0x105   : > { %738 = vst.msk [vmem:[%s1185_s27 + $0x38] sm:$0xf] %vm723_vm1, %v951_v5  ;;  %v965_v13 = vpack.c.bf16 %v591_v6, %v591_v6  ;;  %v952_v14 = vpack.c.bf16 %v578_v7, %v578_v7  ;;  %v592_v15 = vmax.f32 %v552_v8, 0.0 }
 0x106   : > { %754 = vst.msk [vmem:[%s1185_s27 + $0x78] sm:$0xf] %vm723_vm1, %v967_v9  ;;  %736 = vst.msk [vmem:[%s1185_s27 + $0x30] sm:$0xf] %vm723_vm1, %v949_v10  ;;  %v968_v16 = vpack.c.bf16 %v594_v11, %v594_v11  ;;  %v950_v18 = vpack.c.bf16 %v576_v12, %v576_v12 }
 0x107   : > { %752 = vst.msk [vmem:[%s1185_s27 + $0x70] sm:$0xf] %vm723_vm1, %v965_v13  ;;  %739 = vst.msk [vmem:[%s1185_s27 + $0x3c] sm:$0xf] %vm723_vm1, %v952_v14  ;;  %v966_v17 = vpack.c.bf16 %v592_v15, %v592_v15 }
 0x108   : > { %755 = vst.msk [vmem:[%s1185_s27 + $0x7c] sm:$0xf] %vm723_vm1, %v968_v16  ;;  %737 = vst.msk [vmem:[%s1185_s27 + $0x34] sm:$0xf] %vm723_vm1, %v950_v18 }
 0x109   : > { %753 = vst.msk [vmem:[%s1185_s27 + $0x74] sm:$0xf] %vm723_vm1, %v966_v17 }
 0x10a PF: > { %s13_s14 = sadd.s32 1, %s1085_s14   ;;  %s1291_s12 = smov %s1081_s13 }
 0x10b   : > { %p10_p5 = scmp.ge.s32.totalorder %s13_s14, 6   ;;  %s1292_s13 = smov %s1294_s15 }
 0x10d   :  { %12 = sbr.rel (!%p10_p5) target bundleno = 2 (0x2), region = 68 }

</bundles_post_ra>
